<compile_context>
chip_gen: v6e
topology: v6e:2x2x1
jax: 0.10.0
libtpu: 0.0.40
codegen_flags: <defaults>
</compile_context>

<pallas_src>
import jax
import jax.numpy as jnp
from jax.experimental import pallas as pl
from jax.experimental.pallas import tpu as pltpu


_LANE = 128
_VMEM_LIMIT = 32 * 1024 * 1024       # safe scoped-VMEM limit on v5e/v6e/v7x
_PASS1_BUDGET = 24 * 1024 * 1024     # pass-1 VMEM working-set budget (bytes)
_PASS2_BUDGET = 16 * 1024 * 1024     # pass-2 budget -> ~8 MiB per output buffer


def _round_down_lane(x):
    return max(_LANE, (x // _LANE) * _LANE)


def _pass1_tile(c_in, c_out, hw, x_itemsize, budget_bytes):
    """Lane tile for the pooling pass, derived from a VMEM byte budget."""
    # Fixed VMEM costs: conv weight / scale / shift / tiny output are all
    # double-buffered by the default pipeline; the lane-dense accumulator is a
    # single scratch buffer.  Whatever remains goes to the (double-buffered)
    # input tile.
    fixed = (2 * (c_out * c_in * 4)          # conv weight (f32), x2 buffers
             + 2 * 3 * (c_out * 4)           # scale, shift, pooled output
             + c_in * _LANE * 4)             # accumulator scratch
    avail = max(budget_bytes - fixed, 2 * c_in * _LANE * x_itemsize)
    per_buffer = avail // 2                  # input is double-buffered
    max_lanes = per_buffer // (c_in * x_itemsize)
    if hw <= max_lanes:
        return hw                            # one contiguous full-HW DMA
    return _round_down_lane(max_lanes)


def _pass2_tile(n, c_out, hw, out_itemsize, budget_bytes):
    """Lane tile for the broadcast-writeback pass."""
    per_buffer = budget_bytes // 2           # output is double-buffered
    max_lanes = max(_LANE, per_buffer // (c_out * out_itemsize))
    t = hw if hw <= max_lanes else _round_down_lane(max_lanes)
    if n == 1 and hw >= 2 * _LANE:
        # Keep >= 2 grid steps so both v7x TensorCores share the store BW.
        t = min(t, _round_down_lane(hw // 2))
    return t


def _make_fused_pool_kernel(hw):
    """Single-tile pass 1: full-HW mean + 1x1 conv + folded BN + ReLU."""
    inv_hw = 1.0 / float(hw)

    def kernel(x_ref, w_ref, scale_ref, shift_ref, y_ref):
        x = x_ref[...].astype(jnp.float32)                     # (C_in, HW)
        pooled = jnp.sum(x, axis=-1, keepdims=True) * inv_hw   # (C_in, 1)
        y = jnp.dot(w_ref[...], pooled,
                    preferred_element_type=jnp.float32)        # (C_out, 1)
        y = y * scale_ref[...] + shift_ref[...]                 # folded BN
        y_ref[...] = jnp.maximum(y, 0.0).astype(y_ref.dtype)    # ReLU

    return kernel


def _make_tiled_pool_kernel(hw, t_in):
    """Multi-tile pass 1 with a lane-dense (C_in, 128) running accumulator."""
    assert t_in % _LANE == 0
    n_chunks = t_in // _LANE
    inv_hw = 1.0 / float(hw)
    ragged = (hw % t_in) != 0

    def kernel(x_ref, w_ref, scale_ref, shift_ref, y_ref, acc_ref):
        k = pl.program_id(1)

        @pl.when(k == 0)
        def _init():
            acc_ref[...] = jnp.zeros_like(acc_ref)

        x = x_ref[...].astype(jnp.float32)                      # (C_in, T)
        if ragged:
            # Mask lanes past the true H*W in the (partial) last tile.
            col = jax.lax.broadcasted_iota(jnp.int32, x.shape, 1)
            x = jnp.where(k * t_in + col < hw, x, 0.0)

        # VPU-only adds of aligned 128-lane chunks into the lane-dense
        # accumulator; the single cross-lane (XLU) reduce happens only once,
        # in the finalize step below.
        partial = x[:, 0:_LANE]
        for c in range(1, n_chunks):
            partial = partial + x[:, c * _LANE:(c + 1) * _LANE]
        acc_ref[...] += partial

        @pl.when(k == pl.num_programs(1) - 1)
        def _finalize():
            pooled = jnp.sum(acc_ref[...], axis=-1, keepdims=True) * inv_hw
            y = jnp.dot(w_ref[...], pooled,
                        preferred_element_type=jnp.float32)     # (C_out, 1)
            y = y * scale_ref[...] + shift_ref[...]              # folded BN
            y_ref[...] = jnp.maximum(y, 0.0).astype(y_ref.dtype)

    return kernel


def _broadcast_kernel(y_ref, o_ref):
    """Pass 2: broadcast the 1x1 pooled map over a lane-dense spatial tile."""
    o_ref[...] = jnp.broadcast_to(y_ref[...].astype(o_ref.dtype), o_ref.shape)


def aspp_pooling(x, conv_weight, gamma, beta, running_mean, running_var,
                 eps=1e-5, *, reduce_tile=None, bcast_tile=None):
    """x: (N, C_in, H, W); conv_weight: (C_out, C_in, 1, 1). Eval-mode BN."""
    n, c_in, h, w = x.shape
    c_out = conv_weight.shape[0]
    hw = h * w
    x_itemsize = jnp.dtype(x.dtype).itemsize

    # --- glue: flatten spatial dims, fold BN into per-channel scale/shift ---
    x_flat = x.reshape(n, c_in, hw)
    w2 = conv_weight.reshape(c_out, c_in).astype(jnp.float32)
    scale = (gamma.astype(jnp.float32) /
             jnp.sqrt(running_var.astype(jnp.float32) + eps))
    shift = beta.astype(jnp.float32) - running_mean.astype(jnp.float32) * scale
    scale = scale.reshape(c_out, 1)
    shift = shift.reshape(c_out, 1)

    # --- pass 1: global-avg-pool + 1x1 conv + BN + ReLU ---------------------
    if reduce_tile is None:
        t_in = _pass1_tile(c_in, c_out, hw, x_itemsize, _PASS1_BUDGET)
    else:
        t_in = hw if hw <= reduce_tile else _round_down_lane(reduce_tile)

    if hw <= t_in:
        # Single contiguous full-HW tile per image: grid=(N,), no carry.
        y = pl.pallas_call(
            _make_fused_pool_kernel(hw),
            out_shape=jax.ShapeDtypeStruct((n, c_out, 1), jnp.float32),
            grid=(n,),
            in_specs=[
                pl.BlockSpec((pl.Squeezed(), c_in, hw), lambda i: (i, 0, 0)),
                pl.BlockSpec((c_out, c_in), lambda i: (0, 0)),
                pl.BlockSpec((c_out, 1), lambda i: (0, 0)),
                pl.BlockSpec((c_out, 1), lambda i: (0, 0)),
            ],
            out_specs=pl.BlockSpec((pl.Squeezed(), c_out, 1),
                                   lambda i: (i, 0, 0)),
            compiler_params=pltpu.CompilerParams(
                dimension_semantics=("parallel",),
                vmem_limit_bytes=_VMEM_LIMIT),
        )(x_flat, w2, scale, shift)
    else:
        n_in_tiles = pl.cdiv(hw, t_in)
        y = pl.pallas_call(
            _make_tiled_pool_kernel(hw, t_in),
            out_shape=jax.ShapeDtypeStruct((n, c_out, 1), jnp.float32),
            grid=(n, n_in_tiles),
            in_specs=[
                pl.BlockSpec((pl.Squeezed(), c_in, t_in),
                             lambda i, k: (i, 0, k)),
                pl.BlockSpec((c_out, c_in), lambda i, k: (0, 0)),
                pl.BlockSpec((c_out, 1), lambda i, k: (0, 0)),
                pl.BlockSpec((c_out, 1), lambda i, k: (0, 0)),
            ],
            out_specs=pl.BlockSpec((pl.Squeezed(), c_out, 1),
                                   lambda i, k: (i, 0, 0)),
            scratch_shapes=[pltpu.VMEM((c_in, _LANE), jnp.float32)],
            compiler_params=pltpu.CompilerParams(
                dimension_semantics=("parallel", "arbitrary"),
                vmem_limit_bytes=_VMEM_LIMIT),
        )(x_flat, w2, scale, shift)

    # --- pass 2: "interpolate" the 1x1 map back to (H, W) == broadcast ------
    # (When N==1 the pass-1 reduction still runs on a single v7x TensorCore;
    #  splitting it into per-core partial sums is a possible further win.)
    if bcast_tile is None:
        t_out = _pass2_tile(n, c_out, hw, x_itemsize, _PASS2_BUDGET)
    else:
        t_out = hw if hw <= bcast_tile else _round_down_lane(bcast_tile)
    n_out_tiles = pl.cdiv(hw, t_out)

    out_flat = pl.pallas_call(
        _broadcast_kernel,
        out_shape=jax.ShapeDtypeStruct((n, c_out, hw), x.dtype),
        grid=(n, n_out_tiles),
        in_specs=[
            pl.BlockSpec((pl.Squeezed(), c_out, 1), lambda i, j: (i, 0, 0)),
        ],
        out_specs=pl.BlockSpec((pl.Squeezed(), c_out, t_out),
                               lambda i, j: (i, 0, j)),
        compiler_params=pltpu.CompilerParams(
            dimension_semantics=("parallel", "parallel"),
            vmem_limit_bytes=_VMEM_LIMIT),
    )(y)

    return out_flat.reshape(n, c_out, h, w)


def _reference(x, conv_weight, gamma, beta, running_mean, running_var,
               eps=1e-5):
    # Pure-JAX reference of the PyTorch forward (eval-mode BN).
    pooled = jnp.mean(x, axis=(2, 3))                              # (N, C_in)
    y = pooled @ conv_weight.reshape(conv_weight.shape[0], -1).T   # (N, C_out)
    y = (y - running_mean) / jnp.sqrt(running_var + eps) * gamma + beta
    y = jnp.maximum(y, 0.0)
    n, c_out = y.shape
    h, w = x.shape[2], x.shape[3]
    return jnp.broadcast_to(y[:, :, None, None], (n, c_out, h, w))


if __name__ == "__main__":
    key = jax.random.PRNGKey(0)
    k_x, k_w, k_g, k_b, k_m, k_v, k_x2 = jax.random.split(key, 7)

    # ---- test 1: default (budget-derived) tiling, divisible spatial size ---
    N, C_in, H, W = 2, 4, 16, 16
    C_out = 8

    x = jax.random.normal(k_x, (N, C_in, H, W), dtype=jnp.float32)
    conv_weight = jax.random.normal(k_w, (C_out, C_in, 1, 1),
                                    dtype=jnp.float32) * 0.1
    gamma = 1.0 + 0.1 * jax.random.normal(k_g, (C_out,), dtype=jnp.float32)
    beta = 0.1 * jax.random.normal(k_b, (C_out,), dtype=jnp.float32)
    running_mean = 0.05 * jax.random.normal(k_m, (C_out,), dtype=jnp.float32)
    running_var = 1.0 + 0.1 * jax.random.uniform(k_v, (C_out,),
                                                 dtype=jnp.float32)

    ref = _reference(x, conv_weight, gamma, beta, running_mean, running_var)
    out = aspp_pooling(x, conv_weight, gamma, beta, running_mean, running_var)
    out = jax.block_until_ready(out)
    assert out.shape == (N, C_out, H, W)
    assert jnp.allclose(out, ref, atol=1e-5, rtol=1e-5)

    # ---- test 2: N==1, non-divisible spatial size (18x18 -> hw=324) --------
    # Default path: single-tile pass 1, >=2-tile pass 2 with a ragged last
    # output block (exercises the clipped writeback the review flagged).
    x2 = jax.random.normal(k_x2, (1, C_in, 18, 18), dtype=jnp.float32)
    ref2 = _reference(x2, conv_weight, gamma, beta, running_mean, running_var)
    out2 = aspp_pooling(x2, conv_weight, gamma, beta, running_mean,
                        running_var)
    out2 = jax.block_until_ready(out2)
    assert jnp.allclose(out2, ref2, atol=1e-5, rtol=1e-5)

    # ---- test 3: force the multi-tile accumulator path (ragged last tile) --
    out3 = aspp_pooling(x2, conv_weight, gamma, beta, running_mean,
                        running_var, reduce_tile=128, bcast_tile=128)
    out3 = jax.block_until_ready(out3)
    assert jnp.allclose(out3, ref2, atol=1e-5, rtol=1e-5)

    print("KERNEL_OK")
</pallas_src>

<mosaic_0001>
module attributes {stable_mosaic.version = 11 : i64} {
  func.func @kernel(%arg0: i32, %arg1: memref<1x4x256xf32, #tpu.memory_space<vmem>>, %arg2: memref<8x4xf32, #tpu.memory_space<vmem>>, %arg3: memref<8x1xf32, #tpu.memory_space<vmem>>, %arg4: memref<8x1xf32, #tpu.memory_space<vmem>>, %arg5: memref<1x8x1xf32, #tpu.memory_space<vmem>>) attributes {dimension_semantics = [#tpu.dimension_semantics<parallel>], iteration_bounds = array<i64: 2>, scalar_prefetch = 0 : i64, scratch_operands = 0 : i64, tpu.core_type = #tpu.core_type<tc>, window_params = [{transform_indices = @transform_0, window_bounds = array<i64: 1, 4, 256>}, {pipeline_mode = #tpu.pipeline_mode<synchronous>, transform_indices = @transform_1, window_bounds = array<i64: 8, 4>}, {pipeline_mode = #tpu.pipeline_mode<synchronous>, transform_indices = @transform_2, window_bounds = array<i64: 8, 1>}, {pipeline_mode = #tpu.pipeline_mode<synchronous>, transform_indices = @transform_3, window_bounds = array<i64: 8, 1>}, {transform_indices = @transform_4, window_bounds = array<i64: 1, 8, 1>}]} {
    %c0 = arith.constant 0 : index
    %c0_0 = arith.constant 0 : index
    %c0_1 = arith.constant 0 : index
    %0 = vector.load %arg1[%c0, %c0_0, %c0_1] : memref<1x4x256xf32, #tpu.memory_space<vmem>>, vector<1x4x256xf32>
    %1 = vector.shape_cast %0 : vector<1x4x256xf32> to vector<4x256xf32>
    %cst = arith.constant dense<0.000000e+00> : vector<4xf32>
    %2 = vector.multi_reduction <add>, %1, %cst [1] : vector<4x256xf32> to vector<4xf32>
    %3 = vector.shape_cast %2 : vector<4xf32> to vector<4x1xf32>
    %cst_2 = arith.constant 3.906250e-03 : f32
    %4 = vector.broadcast %cst_2 : f32 to vector<4x1xf32>
    %5 = arith.mulf %3, %4 : vector<4x1xf32>
    %c0_3 = arith.constant 0 : index
    %c0_4 = arith.constant 0 : index
    %6 = vector.load %arg2[%c0_3, %c0_4] : memref<8x4xf32, #tpu.memory_space<vmem>>, vector<8x4xf32>
    %cst_5 = arith.constant dense<0.000000e+00> : vector<8x1xf32>
    %7 = tpu.matmul %6, %5, %cst_5 {dimension_numbers = #tpu.dot_dimension_numbers<[1], [0], [0], [1], [0, 0, 1, 1], [], []>} : vector<8x4xf32>, vector<4x1xf32>, vector<8x1xf32> -> vector<8x1xf32>
    %c0_6 = arith.constant 0 : index
    %c0_7 = arith.constant 0 : index
    %8 = vector.load %arg3[%c0_6, %c0_7] : memref<8x1xf32, #tpu.memory_space<vmem>>, vector<8x1xf32>
    %9 = arith.mulf %7, %8 : vector<8x1xf32>
    %c0_8 = arith.constant 0 : index
    %c0_9 = arith.constant 0 : index
    %10 = vector.load %arg4[%c0_8, %c0_9] : memref<8x1xf32, #tpu.memory_space<vmem>>, vector<8x1xf32>
    %11 = arith.addf %9, %10 : vector<8x1xf32>
    %cst_10 = arith.constant 0.000000e+00 : f32
    %12 = vector.broadcast %cst_10 : f32 to vector<8x1xf32>
    %13 = arith.maximumf %11, %12 : vector<8x1xf32>
    %c0_11 = arith.constant 0 : index
    %c0_12 = arith.constant 0 : index
    %c0_13 = arith.constant 0 : index
    %14 = vector.load %arg5[%c0_11, %c0_12, %c0_13] : memref<1x8x1xf32, #tpu.memory_space<vmem>>, vector<1x8x1xf32>
    %15 = vector.shape_cast %14 : vector<1x8x1xf32> to vector<8x1xf32>
    %16 = vector.shape_cast %13 : vector<8x1xf32> to vector<1x8x1xf32>
    tpu.vector_store %arg5[%c0_11, %c0_12, %c0_13], %16 {strides = array<i32>} : memref<1x8x1xf32, #tpu.memory_space<vmem>>, vector<1x8x1xf32>,
    return
  }
  func.func @transform_0(%arg0: i32) -> (i32, i32, i32) {
    %c0_i32 = arith.constant 0 : i32
    %c0_i32_0 = arith.constant 0 : i32
    %c0_i32_1 = arith.constant 0 : i32
    return %arg0, %c0_i32, %c0_i32_0 : i32, i32, i32
  }
  func.func @transform_1(%arg0: i32) -> (i32, i32) {
    %c0_i32 = arith.constant 0 : i32
    %c0_i32_0 = arith.constant 0 : i32
    %c0_i32_1 = arith.constant 0 : i32
    return %c0_i32, %c0_i32_0 : i32, i32
  }
  func.func @transform_2(%arg0: i32) -> (i32, i32) {
    %c0_i32 = arith.constant 0 : i32
    %c0_i32_0 = arith.constant 0 : i32
    %c0_i32_1 = arith.constant 0 : i32
    return %c0_i32, %c0_i32_0 : i32, i32
  }
  func.func @transform_3(%arg0: i32) -> (i32, i32) {
    %c0_i32 = arith.constant 0 : i32
    %c0_i32_0 = arith.constant 0 : i32
    %c0_i32_1 = arith.constant 0 : i32
    return %c0_i32, %c0_i32_0 : i32, i32
  }
  func.func @transform_4(%arg0: i32) -> (i32, i32, i32) {
    %c0_i32 = arith.constant 0 : i32
    %c0_i32_0 = arith.constant 0 : i32
    %c0_i32_1 = arith.constant 0 : i32
    return %arg0, %c0_i32, %c0_i32_0 : i32, i32, i32
  }
}

</mosaic_0001>

<bundles_post_ra>
// kernel: tpu_custom_call.1
= control target key start
LH: loop header
LB: loop body
LE: loop exit
PB: predicated region body
PF: predicated region fallthrough
CT: control target
= control target key end

     0   :  { %s411_s15 = smov 0   ;;  %s440_s0 = inlined_call_operand.vmem [shape: f32[2,4,256], index: 0, kind: input, shape index: {}]   ;;  %s441_s1 = inlined_call_operand.vmem [shape: f32[8,4], index: 1, kind: input, shape index: {}]   ;;  %s442_s2 = inlined_call_operand.vmem [shape: f32[8,1], index: 2, kind: input, shape index: {}]   ;;  %s443_s3 = inlined_call_operand.vmem [shape: f32[8,1], index: 3, kind: input, shape index: {}]   ;;  %s444_s4 = inlined_call_operand.vmem [shape: f32[2,8,1], index: 4, kind: output, shape index: {}]  }
   0x1 LB: > { %s345_s16 = sadd.s32 4294967295, %s382_s15   ;;  %p349_p0 = scmp.ge.s32.totalorder %s382_s15, 1  ;;  %s382_s15 = sphi %s411_s15, %s14_s15  }
   0x2   : > { %p162_p1 = scmp.lt.s32.totalorder %s382_s15, 3 }
   0x4   : > { %p163_p2 = pnand %p349_p0, %p162_p1 }
   0x5   : > { %p187_p3 = scmp.lt.s32.totalorder (!%p163_p2), %s345_s16, 1 }
   0x6   : > { %166 = sbr.rel (%p163_p2) target bundleno = 361 (0x169), region = 36 }
   0xb   : > { %s446_s16 = smov (!%p187_p3, %s345_s16), 1  ;;  %vm200_vm0 = vcmask 1043456   ;;  %v384_v5 = vmov 0.0   ;;  %vm385_vm1 = vmmov 0   ;;  %v207_v8 = vld [vmem:[%s441_s1] sm:$0xff]  ;;  %vm208_vm2 = vcmask 31744  }
   0xc   : > { %s357_s17 = sshll.u32 %s446_s16, 3  ;;  %360 = vmatprep.subr.mxu0 %v384_v5  ;;  %362 = vmatprep.mubr.msk.f32.mxu0 %vm385_vm1, %v384_v5  ;;  %v285_v9 = vld [vmem:[%s442_s2] sm:$0xff]  ;;  %vm290_vm3 = vcmask 7168  }
   0xd   : > { %s191_s20 = scalar_lea.vmem %s440_s0, %s357_s17  ;;  %v287_v11 = vld [vmem:[%s443_s3] sm:$0xff]  ;;  %s195_s29 = scalar_lea.vmem %s444_s4, %s357_s17 }
   0xe   : > { %v196_v0 = vld [vmem:[%s191_s20] sm:$0xff] }
   0xf   : > { %v198_v1 = vcombine.high %v196_v0, %v196_v0  ;;  %v201_v2 = vsel %vm200_vm0, %v196_v0, 0.0 }
  0x11   : > { %v202_v3 = vsel %vm200_vm0, %v198_v1, 0.0 }
  0x12   : > { %v203_v4 = vadd.f32 %v202_v3, %v201_v2 }
  0x14   : > { %204 = vadd.xlane.f32.xlu0 %v203_v4 }
  0x9d   : > { %v205_v6 = vpop.xlane.xlu0 %204 }
  0x9e   : > { %v206_v7 = vmul.f32 0.00390625, %v205_v6 }
  0xa0   : > { %361 = vmatpush3.msk.msra.mxu0 %vm200_vm0, %v206_v7 }
  0xa1   : > { %363 = vmatmul.mubr.msk.f32.vlgmr.msra.gmra.mxu0 %vm208_vm2, %v207_v8 }
 0x161   : > { %v281_v10 = vpop.f32.mrf.mxu0 }
 0x162   : > { %v286_v12 = vmul.f32 %v285_v9, %v281_v10 }
 0x163   : > { %v364_v13 = vpop.f32.mrf.mxu0 }
 0x164   : > { %v288_v14 = vadd.f32 %v287_v11, %v286_v12 }
 0x166   : > { %v289_v15 = vmax.f32 %v288_v14, 0.0 }
 0x168   : > { %291 = vst.msk [vmem:[%s195_s29] sm:$0xff] %vm290_vm3, %v289_v15 }
 0x169 PF: > { %s14_s15 = sadd.s32 1, %s382_s15  }
 0x16a   : > { %p11_p4 = scmp.ge.s32.totalorder %s14_s15, 4  }
 0x16c   :  { %13 = sbr.rel (!%p11_p4) target bundleno = 1 (0x1), region = 66 }

</bundles_post_ra>
